<compile_context>
chip_gen: v6e
topology: v6e:2x2x1
jax: 0.10.0
libtpu: 0.0.40
codegen_flags: <defaults>
</compile_context>

<pallas_src>
import functools
import math

import jax
import jax.numpy as jnp
from jax import lax
from jax.experimental import pallas as pl
from jax.experimental.pallas import tpu as pltpu


def _round_up(n, m):
    return ((n + m - 1) // m) * m


# ----------------------------------------------------------------------------- kernel
def _mlp_kernel(*refs, num_hidden, bias_slices, head_w_slice, head_b_row):
    # refs = (x_ref, w_0, ..., w_{num_hidden-1}, packed_ref, out_ref)
    x_ref = refs[0]
    w_refs = refs[1:1 + num_hidden]
    packed_ref = refs[1 + num_hidden]      # [total_rows, 1] f32: biases, head w, head b
    out_ref = refs[-1]

    x = x_ref[...]                                        # [tb, in_dim], native dtype

    # First layer: h = W0 @ x^T -- transpose folded into the contraction
    # (contract dim 1 of both operands), so x is never relaid out in VMEM/HBM.
    w0 = w_refs[0][...]                                   # [h0_pad, in_dim]
    off, sz = bias_slices[0]
    b0 = packed_ref[off:off + sz, :]                      # [h0_pad, 1] f32
    h = lax.dot_general(
        w0, x.astype(w0.dtype),
        dimension_numbers=(((1,), (1,)), ((), ())),
        preferred_element_type=jnp.float32)               # [h0_pad, tb] f32 accum
    h = jnp.maximum(h + b0, 0.0)

    # Remaining hidden layers: h = relu(W_i @ h + b_i); batch stays on lanes.
    for i in range(1, num_hidden):
        w = w_refs[i][...]                                # [h_i_pad, h_{i-1}_pad]
        off, sz = bias_slices[i]
        b = packed_ref[off:off + sz, :]                   # [h_i_pad, 1] f32
        h = jnp.dot(w, h.astype(w.dtype), preferred_element_type=jnp.float32)
        h = jnp.maximum(h + b, 0.0)

    # Value head: VPU multiply + sublane (feature-axis) reduction -> lane-dense
    # [1, tb] row; avoids an N=1 MXU matmul and masked [tb, 1] column stores.
    off, sz = head_w_slice
    w_v = packed_ref[off:off + sz, :]                     # [h_last_pad, 1] f32
    b_v = packed_ref[head_b_row:head_b_row + 1, :]        # [1, 1] f32
    v = jnp.sum(h * w_v, axis=0, keepdims=True) + b_v     # [1, tb]
    out_ref[...] = v.astype(out_ref.dtype)


# ----------------------------------------------------------------------------- sizing
def _vmem_tile_bytes(rows, cols, dtype):
    """Layout-aware VMEM footprint of a 2-D tile: lanes pad to 128, sublanes to 8/16/32."""
    itemsize = jnp.dtype(dtype).itemsize
    sublane = 8 * max(1, 4 // itemsize)           # 8 (f32), 16 (bf16), 32 (int8)
    return _round_up(rows, sublane) * _round_up(cols, 128) * itemsize


def _vmem_estimate(tb, in_dim, x_dtype, hidden_pads, param_vmem_bytes, x_buffers):
    est = x_buffers * _vmem_tile_bytes(tb, in_dim, x_dtype)        # streamed x tiles
    est += 2 * _vmem_tile_bytes(1, tb, jnp.float32)                # double-buffered out row
    est += param_vmem_bytes                                        # resident (Buffered(1)) params
    est += sum(_vmem_tile_bytes(d, tb, jnp.float32) for d in hidden_pads)  # live f32 acts (upper bound)
    return est


def _tpu_hw_info():
    """(vmem_capacity_bytes, tensorcores_per_chip) with safe fallbacks."""
    vmem_cap = 128 << 20
    try:
        info = pltpu.get_tpu_info()
        vmem_cap = int(getattr(info, "vmem_capacity_bytes", vmem_cap))
    except Exception:
        pass
    kind = ""
    try:
        kind = jax.devices()[0].device_kind.lower()
    except Exception:
        pass
    tc_per_chip = 2 if ("v7" in kind or vmem_cap <= (64 << 20)) else 1
    return vmem_cap, tc_per_chip


_TILE_LADDER = (16384, 8192, 4096, 2048, 1024, 512, 256, 128)


def _choose_batch_tile(b_pad, fits, tc_per_chip):
    grid128 = b_pad // 128
    # Only enforce an even grid (2-TC split) when it is achievable at all.
    enforce_even = (tc_per_chip > 1 and grid128 >= tc_per_chip
                    and grid128 % tc_per_chip == 0)
    for tb in _TILE_LADDER:
        if tb > b_pad or b_pad % tb:
            continue
        grid = b_pad // tb
        if enforce_even and grid % tc_per_chip:
            continue
        if fits(tb):
            return tb
    return 128


# ----------------------------------------------------------------------------- wrapper
def value_network_forward(x, weights, biases, *, batch_tile=None,
                          compute_dtype=None, vmem_budget_bytes=None):
    """Fused ValueNetwork forward.

    x:       [B, input_size] (f32 or bf16 -- pass bf16 from the producer to halve
             x HBM traffic; no wrapper-side cast is ever done).
    weights: torch-layout [out_i, in_i] per layer; value head [1, last_dim].
    biases:  1-D biases [out_i]; value head [1].
    Returns: [B, 1] float32.
    """
    B, in_dim = x.shape
    num_hidden = len(weights) - 1
    assert num_hidden >= 1, "ValueNetwork needs at least one hidden layer"

    # Weight MXU dtype follows x (bf16 x -> bf16 weights) unless overridden.
    if compute_dtype is None:
        compute_dtype = jnp.bfloat16 if x.dtype == jnp.bfloat16 else jnp.float32
    w_align = 16 if jnp.dtype(compute_dtype).itemsize < 4 else 8

    # ---- prepare kernel-layout params (pad hidden widths; pack biases + head) ----
    kweights = []
    bias_chunks, bias_slices = [], []
    off = 0
    prev_pad = in_dim
    for i in range(num_hidden):
        w = jnp.asarray(weights[i], jnp.float32)              # [out_i, in_i]
        b = jnp.asarray(biases[i], jnp.float32).reshape(-1)
        out_i = w.shape[0]
        out_pad = _round_up(out_i, w_align)
        w = jnp.pad(w, ((0, out_pad - out_i), (0, prev_pad - w.shape[1])))
        kweights.append(w.astype(compute_dtype))              # MXU operand
        bias_chunks.append(jnp.pad(b, (0, out_pad - out_i)).reshape(out_pad, 1))
        bias_slices.append((off, out_pad))
        off += out_pad
        prev_pad = out_pad
    # Value head stays f32 (VPU multiply + sublane reduce consumes it).
    w_v = jnp.asarray(weights[-1], jnp.float32).reshape(-1)
    w_v = jnp.pad(w_v, (0, prev_pad - w_v.shape[0])).reshape(prev_pad, 1)
    b_v = jnp.asarray(biases[-1], jnp.float32).reshape(1, 1)
    head_w_slice = (off, prev_pad)
    off += prev_pad
    head_b_row = off
    off += 1
    packed = jnp.concatenate(bias_chunks + [w_v, b_v], axis=0)   # [off, 1] f32

    hidden_pads = [w.shape[0] for w in kweights]
    param_vmem = sum(_vmem_tile_bytes(w.shape[0], w.shape[1], w.dtype) for w in kweights)
    param_vmem += _vmem_tile_bytes(packed.shape[0], 1, jnp.float32)

    # ---- generation-aware VMEM budget & batch tiling ----
    vmem_cap, tc_per_chip = _tpu_hw_info()
    budget = vmem_budget_bytes if vmem_budget_bytes is not None else (vmem_cap * 3) // 4

    b_pad = max(_round_up(B, 128), 128)
    x_buffers = 3  # conservative estimate (Buffered(3) on the streamed x input)

    def fits(tb):
        return _vmem_estimate(tb, in_dim, x.dtype, hidden_pads, param_vmem,
                              x_buffers) <= budget

    if batch_tile is None:
        tb = _choose_batch_tile(b_pad, fits, tc_per_chip)
    else:
        tb = int(batch_tile)
        b_pad = _round_up(B, tb)
    assert tb % 128 == 0, "batch tile must be a multiple of 128 (lane-dense output)"
    assert b_pad % tb == 0
    grid = b_pad // tb

    x_in = jnp.pad(x, ((0, b_pad - B), (0, 0))) if b_pad != B else x

    est = _vmem_estimate(tb, in_dim, x.dtype, hidden_pads, param_vmem, x_buffers)
    # Always set the scoped-VMEM limit explicitly (v5e default is only 16 MiB);
    # cap well under physical VMEM (64 MiB on v7x, 128 MiB on v5e/v6e).
    cap = (48 << 20) if vmem_cap <= (64 << 20) else (100 << 20)
    vmem_limit = int(min(cap, max(est + (8 << 20), 32 << 20)))

    # ---- specs ----
    if grid >= 3:
        x_spec = pl.BlockSpec((tb, in_dim), lambda i: (i, 0),
                              pipeline_mode=pl.Buffered(3))
    else:
        x_spec = pl.BlockSpec((tb, in_dim), lambda i: (i, 0))
    in_specs = [x_spec]
    for w in kweights:
        # Constant blocks: one resident copy instead of double-buffering.
        in_specs.append(pl.BlockSpec(w.shape, lambda i: (0, 0),
                                     pipeline_mode=pl.Buffered(1)))
    in_specs.append(pl.BlockSpec(packed.shape, lambda i: (0, 0),
                                 pipeline_mode=pl.Buffered(1)))
    out_spec = pl.BlockSpec((1, tb), lambda i: (0, i))   # lane-dense [1, tb] rows

    flops = int(2 * b_pad * sum(math.prod(jnp.asarray(w).shape) for w in weights))
    bytes_accessed = int(
        b_pad * in_dim * jnp.dtype(x.dtype).itemsize
        + sum(w.size * jnp.dtype(w.dtype).itemsize for w in kweights)
        + packed.size * 4
        + b_pad * 4)

    kernel = functools.partial(
        _mlp_kernel, num_hidden=num_hidden, bias_slices=tuple(bias_slices),
        head_w_slice=head_w_slice, head_b_row=head_b_row)

    out = pl.pallas_call(
        kernel,
        out_shape=jax.ShapeDtypeStruct((1, b_pad), jnp.float32),
        grid_spec=pltpu.PrefetchScalarGridSpec(
            num_scalar_prefetch=0,
            grid=(grid,),
            in_specs=in_specs,
            out_specs=out_spec,
        ),
        compiler_params=pltpu.CompilerParams(
            dimension_semantics=("parallel",),
            vmem_limit_bytes=vmem_limit),
        cost_estimate=pl.CostEstimate(
            flops=flops, transcendentals=0, bytes_accessed=bytes_accessed),
    )(x_in, *kweights, packed)

    out = out.reshape(b_pad, 1)
    return out[:B] if b_pad != B else out


# ----------------------------------------------------------------------------- helpers
def init_value_network_params(key, input_size, layers_dim):
    """Xavier-normal weights (torch layout [out, in]), zero biases (matches torch init)."""
    dims = [input_size] + list(layers_dim) + [1]
    weights, biases = [], []
    for i in range(len(dims) - 1):
        fan_in, fan_out = dims[i], dims[i + 1]
        key, sub = jax.random.split(key)
        std = (2.0 / (fan_in + fan_out)) ** 0.5
        weights.append(std * jax.random.normal(sub, (fan_out, fan_in), dtype=jnp.float32))
        biases.append(jnp.zeros((fan_out,), dtype=jnp.float32))
    return weights, biases


def value_network_reference(x, weights, biases):
    h = jnp.asarray(x, jnp.float32)
    for i in range(len(weights) - 1):
        h = jnp.maximum(h @ weights[i].T + biases[i], 0.0)
    return h @ weights[-1].T + biases[-1]


# ----------------------------------------------------------------------------- tests
if __name__ == "__main__":
    key = jax.random.PRNGKey(0)
    input_size = 16
    layers_dim = [32, 32]

    key, kp = jax.random.split(key)
    weights, biases = init_value_network_params(kp, input_size, layers_dim)

    # 1) tiny shape matching the torch-module harness (B=8 -> padded to 128, grid 1).
    key, kx = jax.random.split(key)
    x_small = jax.random.normal(kx, (8, input_size), dtype=jnp.float32)
    out_small = jax.block_until_ready(value_network_forward(x_small, weights, biases))
    ref_small = value_network_reference(x_small, weights, biases)
    assert out_small.shape == (8, 1)
    assert jnp.allclose(out_small, ref_small, atol=1e-4, rtol=1e-4)

    # 2) 128-multiple batch, f32 streaming path (even grid on 2-TC chips).
    key, kx2 = jax.random.split(key)
    x_big = jax.random.normal(kx2, (2048, input_size), dtype=jnp.float32)
    out_big = jax.block_until_ready(value_network_forward(x_big, weights, biases))
    ref_big = value_network_reference(x_big, weights, biases)
    assert out_big.shape == (2048, 1)
    assert jnp.allclose(out_big, ref_big, atol=1e-4, rtol=1e-4)

    # 3) ragged batch (B=300 -> padded to 384, output sliced back to [300, 1]).
    key, kx3 = jax.random.split(key)
    x_odd = jax.random.normal(kx3, (300, input_size), dtype=jnp.float32)
    out_odd = jax.block_until_ready(value_network_forward(x_odd, weights, biases))
    ref_odd = value_network_reference(x_odd, weights, biases)
    assert out_odd.shape == (300, 1)
    assert jnp.allclose(out_odd, ref_odd, atol=1e-4, rtol=1e-4)

    # 4) bf16-producer path: x arrives already in bf16 (no f32->bf16 wrapper cast),
    #    hidden weights follow automatically; accum / bias / ReLU / head stay f32.
    x_bf16 = x_big.astype(jnp.bfloat16)
    out_bf16 = jax.block_until_ready(value_network_forward(x_bf16, weights, biases))
    assert out_bf16.shape == (2048, 1)
    assert jnp.allclose(out_bf16, ref_big, atol=1e-1, rtol=1e-1)

    print("KERNEL_OK")
</pallas_src>

<mosaic_0001>
module attributes {stable_mosaic.version = 11 : i64} {
  func.func @_mlp_kernel(%arg0: i32, %arg1: memref<128x16xf32, #tpu.memory_space<vmem>>, %arg2: memref<32x16xf32, #tpu.memory_space<vmem>>, %arg3: memref<32x32xf32, #tpu.memory_space<vmem>>, %arg4: memref<97x1xf32, #tpu.memory_space<vmem>>, %arg5: memref<1x128xf32, #tpu.memory_space<vmem>>) attributes {dimension_semantics = [#tpu.dimension_semantics<parallel>], iteration_bounds = array<i64: 1>, scalar_prefetch = 0 : i64, scratch_operands = 0 : i64, tpu.core_type = #tpu.core_type<tc>, window_params = [{transform_indices = @transform_0, window_bounds = array<i64: 128, 16>}, {pipeline_mode = #tpu.pipeline_mode<synchronous>, transform_indices = @transform_1, window_bounds = array<i64: 32, 16>}, {pipeline_mode = #tpu.pipeline_mode<synchronous>, transform_indices = @transform_2, window_bounds = array<i64: 32, 32>}, {pipeline_mode = #tpu.pipeline_mode<synchronous>, transform_indices = @transform_3, window_bounds = array<i64: 97, 1>}, {transform_indices = @transform_4, window_bounds = array<i64: 1, 128>}]} {
    %c0 = arith.constant 0 : index
    %c0_0 = arith.constant 0 : index
    %0 = vector.load %arg1[%c0, %c0_0] : memref<128x16xf32, #tpu.memory_space<vmem>>, vector<128x16xf32>
    %c0_1 = arith.constant 0 : index
    %c0_2 = arith.constant 0 : index
    %1 = vector.load %arg2[%c0_1, %c0_2] : memref<32x16xf32, #tpu.memory_space<vmem>>, vector<32x16xf32>
    %c0_3 = arith.constant 0 : index
    %c0_4 = arith.constant 0 : index
    %2 = vector.load %arg4[%c0_3, %c0_4] : memref<97x1xf32, #tpu.memory_space<vmem>>, vector<32x1xf32>
    %cst = arith.constant dense<0.000000e+00> : vector<32x128xf32>
    %3 = tpu.matmul %1, %0, %cst {dimension_numbers = #tpu.dot_dimension_numbers<[1], [1], [0], [0], [0, 0, 1, 0], [], []>} : vector<32x16xf32>, vector<128x16xf32>, vector<32x128xf32> -> vector<32x128xf32>
    %4 = vector.broadcast %2 : vector<32x1xf32> to vector<32x128xf32>
    %5 = arith.addf %3, %4 : vector<32x128xf32>
    %cst_5 = arith.constant 0.000000e+00 : f32
    %6 = vector.broadcast %cst_5 : f32 to vector<32x128xf32>
    %7 = arith.maximumf %5, %6 : vector<32x128xf32>
    %c0_6 = arith.constant 0 : index
    %c0_7 = arith.constant 0 : index
    %8 = vector.load %arg3[%c0_6, %c0_7] : memref<32x32xf32, #tpu.memory_space<vmem>>, vector<32x32xf32>
    %c32 = arith.constant 32 : index
    %c0_8 = arith.constant 0 : index
    %9 = vector.load %arg4[%c32, %c0_8] : memref<97x1xf32, #tpu.memory_space<vmem>>, vector<32x1xf32>
    %cst_9 = arith.constant dense<0.000000e+00> : vector<32x128xf32>
    %10 = tpu.matmul %8, %7, %cst_9 {dimension_numbers = #tpu.dot_dimension_numbers<[1], [0], [0], [1], [0, 0, 1, 1], [], []>} : vector<32x32xf32>, vector<32x128xf32>, vector<32x128xf32> -> vector<32x128xf32>
    %11 = vector.broadcast %9 : vector<32x1xf32> to vector<32x128xf32>
    %12 = arith.addf %10, %11 : vector<32x128xf32>
    %cst_10 = arith.constant 0.000000e+00 : f32
    %13 = vector.broadcast %cst_10 : f32 to vector<32x128xf32>
    %14 = arith.maximumf %12, %13 : vector<32x128xf32>
    %c64 = arith.constant 64 : index
    %c0_11 = arith.constant 0 : index
    %15 = vector.load %arg4[%c64, %c0_11] : memref<97x1xf32, #tpu.memory_space<vmem>>, vector<32x1xf32>
    %c96 = arith.constant 96 : index
    %c0_12 = arith.constant 0 : index
    %16 = vector.load %arg4[%c96, %c0_12] : memref<97x1xf32, #tpu.memory_space<vmem>>, vector<1x1xf32>
    %17 = vector.broadcast %15 : vector<32x1xf32> to vector<32x128xf32>
    %18 = arith.mulf %14, %17 : vector<32x128xf32>
    %cst_13 = arith.constant dense<0.000000e+00> : vector<128xf32>
    %19 = vector.multi_reduction <add>, %18, %cst_13 [0] : vector<32x128xf32> to vector<128xf32>
    %20 = vector.shape_cast %19 : vector<128xf32> to vector<1x128xf32>
    %21 = vector.broadcast %16 : vector<1x1xf32> to vector<1x128xf32>
    %22 = arith.addf %20, %21 : vector<1x128xf32>
    %c0_14 = arith.constant 0 : index
    %c0_15 = arith.constant 0 : index
    %23 = vector.load %arg5[%c0_14, %c0_15] : memref<1x128xf32, #tpu.memory_space<vmem>>, vector<1x128xf32>
    tpu.vector_store %arg5[%c0_14, %c0_15], %22 {strides = array<i32>} : memref<1x128xf32, #tpu.memory_space<vmem>>, vector<1x128xf32>,
    return
  }
  func.func @transform_0(%arg0: i32) -> (i32, i32) {
    %c0_i32 = arith.constant 0 : i32
    %c0_i32_0 = arith.constant 0 : i32
    return %arg0, %c0_i32 : i32, i32
  }
  func.func @transform_1(%arg0: i32) -> (i32, i32) {
    %c0_i32 = arith.constant 0 : i32
    %c0_i32_0 = arith.constant 0 : i32
    %c0_i32_1 = arith.constant 0 : i32
    return %c0_i32, %c0_i32_0 : i32, i32
  }
  func.func @transform_2(%arg0: i32) -> (i32, i32) {
    %c0_i32 = arith.constant 0 : i32
    %c0_i32_0 = arith.constant 0 : i32
    %c0_i32_1 = arith.constant 0 : i32
    return %c0_i32, %c0_i32_0 : i32, i32
  }
  func.func @transform_3(%arg0: i32) -> (i32, i32) {
    %c0_i32 = arith.constant 0 : i32
    %c0_i32_0 = arith.constant 0 : i32
    %c0_i32_1 = arith.constant 0 : i32
    return %c0_i32, %c0_i32_0 : i32, i32
  }
  func.func @transform_4(%arg0: i32) -> (i32, i32) {
    %c0_i32 = arith.constant 0 : i32
    %c0_i32_0 = arith.constant 0 : i32
    return %c0_i32, %arg0 : i32, i32
  }
}

</mosaic_0001>

<bundles_post_ra>
// kernel: tpu_custom_call.1
= control target key start
LH: loop header
LB: loop body
LE: loop exit
PB: predicated region body
PF: predicated region fallthrough
CT: control target
= control target key end

     0   :  { %vm62_vm0 = vcmask 130048   ;;  %v531_v2 = vmov 0   ;;  %s712_s0 = inlined_call_operand.vmem [shape: f32[128,16], index: 0, kind: input, shape index: {}]   ;;  %s713_s1 = inlined_call_operand.vmem [shape: f32[32,16], index: 1, kind: input, shape index: {}]   ;;  %s714_s2 = inlined_call_operand.vmem [shape: f32[32,32], index: 2, kind: input, shape index: {}]   ;;  %s715_s3 = inlined_call_operand.vmem [shape: f32[97,1], index: 3, kind: input, shape index: {}]   ;;  %s716_s4 = inlined_call_operand.hbm [shape: f32[1,128], index: 4, kind: output, shape index: {}]  }
   0x1   :  { %v33_v0 = vld [vmem:[%s712_s0 + $0x78] sm:$0xff]  ;;  %v32_v1 = vld [vmem:[%s712_s0 + $0x70] sm:$0xff]  ;;  %507 = vset.pattern.permute.xlu0 %v531_v2  ;;  %508 = vset.pattern.permute.xlu1 %v531_v2  ;;  %v31_v3 = vld [vmem:[%s712_s0 + $0x68] sm:$0xff] }
   0x2   :  { %453 = vmatprep.subr.msk.mxu0 %vm62_vm0, %v33_v0  ;;  %v34_v4 = vld [vmem:[%s713_s1] sm:$0xff]  ;;  %v41_v5 = vld [vmem:[%s715_s3 + $0x18] sm:$0xff]  ;;  %v39_v6 = vld [vmem:[%s715_s3 + $0x8] sm:$0xff] }
   0x3   :  { %454 = vmatpush3.xpose.msk.msra.mxu0 %vm62_vm0, %v33_v0  ;;  %485 = vmatprep.mubr.msk.f32.mxu0 %vm62_vm0, %v34_v4  ;;  %v30_v7 = vld [vmem:[%s712_s0 + $0x60] sm:$0xff]  ;;  %v40_v8 = vld [vmem:[%s715_s3 + $0x10] sm:$0xff] }
   0x4   :  { %455 = vmatprep.subr.msk.mxu0 %vm62_vm0, %v32_v1  ;;  %59 = vperm.xlu0 %507, %v41_v5   ;;  %v38_v9 = vld [vmem:[%s715_s3] sm:$0xff] }
   0x5   :  { %49 = vperm.xlu1 %508, %v39_v6  }
   0x7   :  { %456 = vmatpush3.xpose.msk.msra.mxu0 %vm62_vm0, %v32_v1 }
   0x8   :  { %457 = vmatprep.subr.msk.mxu0 %vm62_vm0, %v31_v3  ;;  %54 = vperm.xlu0 %507, %v40_v8  }
   0xb   :  { %458 = vmatpush3.xpose.msk.msra.mxu0 %vm62_vm0, %v31_v3 }
   0xc   :  { %459 = vmatprep.subr.msk.mxu0 %vm62_vm0, %v30_v7 }
   0xd   :  { %9 = vsyncpa [#allocation3], 0  ;;  %v29_v10 = vld [vmem:[%s712_s0 + $0x58] sm:$0xff]  ;;  %v216_v11 = vld [vmem:[%s715_s3 + $0x20] sm:$0xff]  ;;  %44 = vperm.xlu1 %508, %v38_v9   ;;  %vm240_vm1 = vcmask 261120  }
   0xe   :  { %v217_v12 = vld [vmem:[%s715_s3 + $0x28] sm:$0xff]  ;;  %222 = vperm.xlu0 %507, %v216_v11   ;;  %v28_v13 = vld [vmem:[%s712_s0 + $0x50] sm:$0xff]  ;;  %v219_v15 = vld [vmem:[%s715_s3 + $0x38] sm:$0xff] }
   0xf   :  { %460 = vmatpush3.xpose.msk.msra.mxu0 %vm62_vm0, %v30_v7  ;;  %v218_v14 = vld [vmem:[%s715_s3 + $0x30] sm:$0xff]  ;;  %v27_v16 = vld [vmem:[%s712_s0 + $0x48] sm:$0xff]  ;;  %v342_v17 = vld [vmem:[%s715_s3 + $0x40] sm:$0xff] }
  0x10   :  { %461 = vmatprep.subr.msk.mxu0 %vm62_vm0, %v29_v10  ;;  %v343_v18 = vld [vmem:[%s715_s3 + $0x48] sm:$0xff]  ;;  %v26_v19 = vld [vmem:[%s712_s0 + $0x40] sm:$0xff]  ;;  %v344_v20 = vld [vmem:[%s715_s3 + $0x50] sm:$0xff] }
  0x11   :  { %227 = vperm.xlu1 %508, %v217_v12   ;;  %v345_v21 = vld [vmem:[%s715_s3 + $0x58] sm:$0xff]  ;;  %v346_v23 = vld [vmem:[%s715_s3 + $0x60] sm:$0x1]  ;;  %v24_v24 = vld [vmem:[%s712_s0 + $0x30] sm:$0xff] }
  0x12   :  { %232 = vperm.xlu0 %507, %v218_v14   ;;  %v25_v22 = vld [vmem:[%s712_s0 + $0x38] sm:$0xff]  ;;  %v23_v25 = vld [vmem:[%s712_s0 + $0x28] sm:$0xff]  ;;  %v22_v26 = vld [vmem:[%s712_s0 + $0x20] sm:$0xff] }
  0x13   :  { %462 = vmatpush3.xpose.msk.msra.mxu0 %vm62_vm0, %v29_v10  ;;  %v21_v27 = vld [vmem:[%s712_s0 + $0x18] sm:$0xff]  ;;  %v20_v28 = vld [vmem:[%s712_s0 + $0x10] sm:$0xff]  ;;  %v19_v29 = vld [vmem:[%s712_s0 + $0x8] sm:$0xff] }
  0x14   :  { %463 = vmatprep.subr.msk.mxu0 %vm62_vm0, %v28_v13  ;;  %v18_v30 = vld [vmem:[%s712_s0] sm:$0xff]  ;;  %v35_v31 = vld [vmem:[%s713_s1 + $0x8] sm:$0xff]  ;;  %v36_v32 = vld [vmem:[%s713_s1 + $0x10] sm:$0xff] }
  0x15   :  { %237 = vperm.xlu1 %508, %v219_v15   ;;  %v37_v33 = vld [vmem:[%s713_s1 + $0x18] sm:$0xff]  ;;  %v212_v34 = vld [vmem:[%s714_s2] sm:$0xff]  ;;  %v213_v51 = vld [vmem:[%s714_s2 + $0x8] sm:$0xff] }
  0x16   :  { %349 = vperm.xlu0 %507, %v342_v17   ;;  %499 = vmatprep.mubr.msk.f32.mxu1 %vm240_vm1, %v212_v34  ;;  %v214_v52 = vld [vmem:[%s714_s2 + $0x10] sm:$0xff]  ;;  %v215_v53 = vld [vmem:[%s714_s2 + $0x18] sm:$0xff]  ;;  %s532_s2 = smov [#allocation2]  }
  0x17   :  { %464 = vmatpush3.xpose.msk.msra.mxu0 %vm62_vm0, %v28_v13  ;;  %s393_s8 = sshll.u32 %s532_s2, 4  ;;  %s394_s8 = int_to_ptr.vmem [resolvable:$true] %s393_s8 }
  0x18   :  { %465 = vmatprep.subr.msk.mxu0 %vm62_vm0, %v27_v16  ;;  %s509_s9 = scalar_lea.vmem %s394_s8, 16  ;;  %s513_s10 = scalar_lea.vmem %s394_s8, 32 }
  0x19   :  { %354 = vperm.xlu1 %508, %v343_v18   ;;  %p510_p0 = scmp.ne.s32.totalorder %s394_s8, %s509_s9  ;;  %p514_p1 = scmp.lt.s32.totalorder %s394_s8, %s394_s8 }
  0x1a   :  { %359 = vperm.xlu0 %507, %v344_v20   ;;  %p515_p2 = scmp.lt.s32.totalorder %s513_s10, %s509_s9 }
  0x1b   :  { %466 = vmatpush3.xpose.msk.msra.mxu0 %vm62_vm0, %v27_v16 }
  0x1c   :  { %467 = vmatprep.subr.msk.mxu0 %vm62_vm0, %v26_v19  ;;  %p516_p3 = por %p515_p2, %p514_p1 }
  0x1d   :  { %364 = vperm.xlu1 %508, %v345_v21  }
  0x1e   :  { %382 = vperm.xlu0 %507, %v346_v23   ;;  %p517_p4 = pnand %p516_p3, %p510_p0 }
  0x1f   :  { %468 = vmatpush3.xpose.msk.msra.mxu0 %vm62_vm0, %v26_v19 }
  0x20   :  { %469 = vmatprep.subr.msk.mxu0 %vm62_vm0, %v25_v22 }
  0x23   :  { %470 = vmatpush3.xpose.msk.msra.mxu0 %vm62_vm0, %v25_v22 }
  0x24   :  { %471 = vmatprep.subr.msk.mxu0 %vm62_vm0, %v24_v24 }
  0x27   :  { %472 = vmatpush3.xpose.msk.msra.mxu0 %vm62_vm0, %v24_v24 }
  0x28   :  { %473 = vmatprep.subr.msk.mxu0 %vm62_vm0, %v23_v25 }
  0x2b   :  { %474 = vmatpush3.xpose.msk.msra.mxu0 %vm62_vm0, %v23_v25 }
  0x2c   :  { %475 = vmatprep.subr.msk.mxu0 %vm62_vm0, %v22_v26 }
  0x2f   :  { %476 = vmatpush3.xpose.msk.msra.mxu0 %vm62_vm0, %v22_v26 }
  0x30   :  { %477 = vmatprep.subr.msk.mxu0 %vm62_vm0, %v21_v27 }
  0x33   :  { %478 = vmatpush3.xpose.msk.msra.mxu0 %vm62_vm0, %v21_v27 }
  0x34   :  { %479 = vmatprep.subr.msk.mxu0 %vm62_vm0, %v20_v28 }
  0x37   :  { %480 = vmatpush3.xpose.msk.msra.mxu0 %vm62_vm0, %v20_v28 }
  0x38   :  { %481 = vmatprep.subr.msk.mxu0 %vm62_vm0, %v19_v29 }
  0x3b   :  { %482 = vmatpush3.xpose.msk.msra.mxu0 %vm62_vm0, %v19_v29 }
  0x3c   :  { %483 = vmatprep.subr.msk.mxu0 %vm62_vm0, %v18_v30 }
  0x3f   :  { %484 = vmatpush3.xpose.msk.msra.mxu0 %vm62_vm0, %v18_v30 }
  0x42   :  { %486 = vmatmul.mubr.msk.f32.vlgmr.msra.gmra.mxu0 %vm62_vm0, %v35_v31 }
  0x43   :  { %488 = vmatprep.mubr.msk.f32.mxu0 %vm62_vm0, %v36_v32 }
  0x46   :  { %489 = vmatmul.mubr.msk.f32.gmra.mxu0 %vm62_vm0, %v37_v33 }
  0x7f   :  { %v60_v35 = vpop.permute.xlu0 %59 }
  0x80   :  { %v50_v37 = vpop.permute.xlu1 %49 }
  0x83   :  { %v55_v41 = vpop.permute.xlu0 %54 }
  0x88   :  { %v45_v46 = vpop.permute.xlu1 %44 }
  0x89   :  { %v223_v54 = vpop.permute.xlu0 %222 }
  0x8c   :  { %v228_v55 = vpop.permute.xlu1 %227 }
  0x8d   :  { %v233_v56 = vpop.permute.xlu0 %232 }
  0x90   :  { %v238_v57 = vpop.permute.xlu1 %237 }
  0x91   :  { %v350_v62 = vpop.permute.xlu0 %349 }
  0x94   :  { %v355_v3 = vpop.permute.xlu1 %354 }
  0x95   :  { %v360_v10 = vpop.permute.xlu0 %359 }
  0x98   :  { %v365_v13 = vpop.permute.xlu1 %364 }
  0x99   :  { %v383_v23 = vpop.permute.xlu0 %382 }
 0x102   :  { %v487_v36 = vpop.f32.mrf.mxu0 }
 0x103   :  { %v195_v43 = vadd.f32 %v487_v36, %v50_v37 }
 0x104   :  { %v189_v38 = vpop.f32.mrf.mxu0 }
 0x105   :  { %v190_v47 = vadd.f32 %v189_v38, %v45_v46  ;;  %v209_v49 = vmax.f32 %v195_v43, 0.0 }
 0x106   :  { %v490_v39 = vpop.f32.mrf.mxu0 }
 0x107   :  { %v205_v40 = vadd.f32 %v490_v39, %v60_v35  ;;  %v208_v50 = vmax.f32 %v190_v47, 0.0 }
 0x108   :  { %v199_v42 = vpop.f32.mrf.mxu0 }
 0x109   :  { %v211_v44 = vmax.f32 %v205_v40, 0.0  ;;  %v200_v45 = vadd.f32 %v199_v42, %v55_v41 }
 0x10b   :  { %v210_v48 = vmax.f32 %v200_v45, 0.0  ;;  %491 = vmatprep.subr.mxu1 %v211_v44 }
 0x10c   :  { %492 = vmatpush3.msra.mxu1 %v211_v44 }
 0x10d   :  { %493 = vmatprep.subr.mxu1 %v210_v48 }
 0x10e   :  { %494 = vmatpush3.msra.mxu1 %v210_v48 }
 0x10f   :  { %495 = vmatprep.subr.mxu1 %v209_v49 }
 0x110   :  { %496 = vmatpush3.msra.mxu1 %v209_v49 }
 0x111   :  { %497 = vmatprep.subr.mxu1 %v208_v50 }
 0x112   :  { %498 = vmatpush3.msra.mxu1 %v208_v50 }
 0x113   :  { %500 = vmatmul.mubr.msk.f32.vlgmr.msra.gmra.mxu1 %vm240_vm1, %v213_v51 }
 0x114   :  { %502 = vmatprep.mubr.msk.f32.mxu1 %vm240_vm1, %v214_v52 }
 0x117   :  { %503 = vmatmul.mubr.msk.f32.gmra.mxu1 %vm240_vm1, %v215_v53 }
 0x1d3   :  { %v501_v58 = vpop.f32.mrf.mxu1 }
 0x1d4   :  { %v325_v59 = vadd.f32 %v501_v58, %v228_v55 }
 0x1d5   :  { %v319_v60 = vpop.f32.mrf.mxu1 }
 0x1d6   :  { %v320_v61 = vadd.f32 %v319_v60, %v223_v54  ;;  %v339_v0 = vmax.f32 %v325_v59, 0.0 }
 0x1d7   :  { %v504_v63 = vpop.f32.mrf.mxu1 }
 0x1d8   :  { %v338_v1 = vmax.f32 %v320_v61, 0.0  ;;  %v335_v2 = vadd.f32 %v504_v63, %v238_v57  ;;  %v368_v7 = vmul.f32 %v355_v3, %v339_v0 }
 0x1d9   :  { %v329_v4 = vpop.f32.mrf.mxu1 }
 0x1da   :  { %v367_v5 = vmul.f32 %v350_v62, %v338_v1  ;;  %v330_v6 = vadd.f32 %v329_v4, %v233_v56  ;;  %v341_v8 = vmax.f32 %v335_v2, 0.0 }
 0x1dc   :  { %v340_v9 = vmax.f32 %v330_v6, 0.0  ;;  %v371_v11 = vadd.f32 %v368_v7, %v367_v5  ;;  %v370_v14 = vmul.f32 %v365_v13, %v341_v8 }
 0x1de   :  { %v369_v12 = vmul.f32 %v360_v10, %v340_v9 }
 0x1e0   :  { %v372_v15 = vadd.f32 %v371_v11, %v369_v12 }
 0x1e2   :  { %v373_v16 = vadd.f32 %v372_v15, %v370_v14 }
 0x1e4   :  { %v374_v17 = vrot.slane %v373_v16, 4 }
 0x1e6   :  { %v375_v18 = vadd.f32 %v374_v17, %v373_v16 }
 0x1e8   :  { %v376_v19 = vrot.slane %v375_v18, 2 }
 0x1ea   :  { %v377_v20 = vadd.f32 %v376_v19, %v375_v18 }
 0x1ec   :  { %v378_v21 = vrot.slane %v377_v20, 1 }
 0x1ee   :  { %v379_v22 = vadd.f32 %v378_v21, %v377_v20 }
 0x1f0   :  { %v385_v24 = vadd.f32 %v383_v23, %v379_v22 }
 0x1f2   :  { %386 = vst [vmem:[#allocation2] sm:$0x1] %v385_v24 }
 0x1f3   :  { %520 = shalt.err (!%p517_p4)
}
 0x1f4   :  { %396 = dma.vmem_to_hbm [thread:$0]  %s394_s8, 16, %s716_s4, [#allocation3]  }
 0x1f5   :  { %529 = dma.done.wait [#allocation3], 16  }
 0x1f6   :  { %530 = vsyncadd [#allocation3], 4294967280 }
 0x1f7   :  { %400 = vsyncpa [#allocation3], 1 }

</bundles_post_ra>
